<compile_context>
chip_gen: v6e
topology: v6e:2x2x1
jax: 0.10.0
libtpu: 0.0.40
codegen_flags: <defaults>
</compile_context>

<pallas_src>
import functools

import jax
import jax.numpy as jnp
from jax.experimental import pallas as pl
from jax.experimental.pallas import tpu as pltpu


def _convffn_kernel(x_ref, w1_ref, b1_ref, w2_ref, b2_ref, o_ref, *,
                    slope, gate_in_bf16):
    # x_ref / o_ref : (Nb, C, T)     (T = spatial tile on the lane axis)
    # w1            : (4C, C) bf16   b1: (4C, 1) f32
    # w2            : (C, 2C) bf16   b2: (C, 1)  f32
    ic = w1_ref.shape[0] // 2
    nb = x_ref.shape[0]

    w1 = w1_ref[...]
    b1 = b1_ref[...]
    w2 = w2_ref[...]
    b2 = b2_ref[...]

    # Static (small, <=8) unroll over the folded batch block.
    for n in range(nb):
        x = x_ref[n]                                   # (C, T), input dtype
        x_bf = x.astype(jnp.bfloat16)                  # bf16 MXU operand

        # Fused first 1x1 conv: one (4C,C)@(C,T) MXU pass, f32 accumulation.
        h = jnp.dot(w1, x_bf, preferred_element_type=jnp.float32) + b1

        # chunk(2, dim=1): free, sublane-aligned static slices of the f32 result.
        h1 = h[:ic, :]
        h2 = h[ic:, :]

        # Gated LeakyReLU: bf16 on v6e/v7x (bf16 VPU), f32 on v5-class chips.
        if gate_in_bf16:
            h1 = h1.astype(jnp.bfloat16)
            h2 = h2.astype(jnp.bfloat16)
        gated = h1 * jnp.where(h2 >= 0, h2, h2 * slope)
        gated = gated.astype(jnp.bfloat16)

        # Second 1x1 conv + bias, f32 accumulation.
        out = jnp.dot(w2, gated, preferred_element_type=jnp.float32) + b2

        # Residual add in f32, lane-dense store in the output dtype.
        o_ref[n] = (x.astype(jnp.float32) + out).astype(o_ref.dtype)


def _round_down_multiple(x, m):
    return (x // m) * m


def _largest_divisor_at_most(n, cap):
    cap = max(1, min(n, cap))
    for d in range(cap, 0, -1):
        if n % d == 0:
            return d
    return 1


# VMEM residency model (bytes): weights + C*T*(16*Nb + 40)
#   16*Nb*C*T : double-buffered f32 in + out blocks
#   ~40*C*T   : f32 (4C,T) accumulator, gate temporaries, bf16 casts, f32 out
_VMEM_IO_BYTES_PER_NCT = 16
_VMEM_TMP_BYTES_PER_CT = 40
_VMEM_MODEL_BUDGET = 30 * 1024 * 1024       # modeled residency, < 40 MiB scoped limit
_TARGET_STEP_X_BYTES = 2 * 1024 * 1024      # ~2 MiB of x per grid step
_MAX_BATCH_FOLD = 8                         # keep the in-kernel unroll small


def _choose_tiles(n, c, hwp):
    """Pick (Nb, T): batch fold and 128-multiple spatial tile dividing hwp."""
    # Resident weights (bf16, conservatively counted double-buffered).
    weight_bytes = 2 * 2 * (4 * c * c + 2 * c * c)
    budget = max(_VMEM_MODEL_BUDGET - weight_bytes, 4 * 1024 * 1024)

    # Largest 128-multiple divisor of hwp that fits the model at Nb=1.
    t_cap = budget // (c * (_VMEM_IO_BYTES_PER_NCT + _VMEM_TMP_BYTES_PER_CT))
    t_cap = max(128, _round_down_multiple(t_cap, 128))
    t = _round_down_multiple(min(hwp, t_cap), 128)
    while hwp % t != 0:
        t -= 128

    # Fold batch elements into the block until ~_TARGET_STEP_X_BYTES per step.
    step_x_bytes = c * t * 4
    nb_target = max(1, _TARGET_STEP_X_BYTES // max(step_x_bytes, 1))
    nb_vmem = max(1, (budget // (c * t) - _VMEM_TMP_BYTES_PER_CT)
                  // _VMEM_IO_BYTES_PER_NCT)
    nb = _largest_divisor_at_most(n, min(nb_target, nb_vmem, _MAX_BATCH_FOLD))

    # Keep >= 2 grid steps when possible (pipelining + v7x dual TensorCores).
    if (n // nb) * (hwp // t) < 2 and nb > 1:
        nb = _largest_divisor_at_most(n, nb // 2)
    return nb, t


def _use_bf16_gate():
    """bf16 gate on v6e/v7x (bf16 VPU); f32 gate on v5-and-older chips."""
    try:
        kind = jax.devices()[0].device_kind.lower()
    except Exception:
        return True
    return not any(tag in kind for tag in ("v2", "v3", "v4", "v5"))


def conv_ffn_pallas(x_nchw, w1, b1, w2, b2, *, slope=0.1):
    """ConvFFN forward.

    x_nchw: (N, C, H, W)   (f32 or bf16; bf16 I/O halves HBM traffic if allowed)
    w1: (4C, C)  (= conv.weight[:, :, 0, 0]),      b1: (4C,)
    w2: (C, 2C)  (= conv_out.weight[:, :, 0, 0]),  b2: (C,)
    """
    N, C, H, W = x_nchw.shape
    ic = 2 * C
    oc4 = 4 * C
    HW = H * W
    HWp = pl.cdiv(HW, 128) * 128           # lane axis padded to a 128 multiple
    Nb, T = _choose_tiles(N, C, HWp)

    x3 = x_nchw.reshape(N, C, HW)          # pure reshape in NCHW; no transpose
    if HWp != HW:
        x3 = jnp.pad(x3, ((0, 0), (0, 0), (0, HWp - HW)))

    # bf16 MXU operands; biases stay f32 (added to f32 accumulators).
    w1_bf = w1.astype(jnp.bfloat16)
    w2_bf = w2.astype(jnp.bfloat16)
    b1c = b1.reshape(oc4, 1).astype(jnp.float32)
    b2c = b2.reshape(C, 1).astype(jnp.float32)

    kernel = functools.partial(_convffn_kernel, slope=slope,
                               gate_in_bf16=_use_bf16_gate())

    out3 = pl.pallas_call(
        kernel,
        out_shape=jax.ShapeDtypeStruct((N, C, HWp), x_nchw.dtype),
        grid=(N // Nb, HWp // T),
        in_specs=[
            pl.BlockSpec((Nb, C, T), lambda n, j: (n, 0, j)),   # x tile
            pl.BlockSpec((oc4, C), lambda n, j: (0, 0)),        # w1 (resident)
            pl.BlockSpec((oc4, 1), lambda n, j: (0, 0)),        # b1
            pl.BlockSpec((C, ic), lambda n, j: (0, 0)),         # w2
            pl.BlockSpec((C, 1), lambda n, j: (0, 0)),          # b2
        ],
        out_specs=pl.BlockSpec((Nb, C, T), lambda n, j: (n, 0, j)),
        compiler_params=pltpu.CompilerParams(
            dimension_semantics=("parallel", "parallel"),       # megacore-friendly
            vmem_limit_bytes=40 * 1024 * 1024,                  # > v5e 16 MiB default,
        ),                                                      # fits v7x 64 MiB VMEM
    )(x3, w1_bf, b1c, w2_bf, b2c)

    if HWp != HW:
        out3 = out3[:, :, :HW]
    return out3.reshape(N, C, H, W)


def conv_ffn_reference(x_nchw, w1, b1, w2, b2, *, slope=0.1):
    """Plain-JAX f32 reference (same math, NCHW in/out)."""
    N, C, H, W = x_nchw.shape
    ic = 2 * C
    xf = x_nchw.reshape(N, C, H * W).astype(jnp.float32)
    h = jnp.einsum("oc,nct->not", w1, xf) + b1[None, :, None]
    x1, x2 = h[:, :ic, :], h[:, ic:, :]
    gated = x1 * jnp.where(x2 >= 0, x2, slope * x2)
    out = jnp.einsum("oc,nct->not", w2, gated) + b2[None, :, None]
    return (xf + out).reshape(N, C, H, W)


if __name__ == "__main__":
    key = jax.random.PRNGKey(0)
    N, C, H, W = 2, 4, 16, 16
    ic = 2 * C  # expansion_factor = 2

    k_x, k_w1, k_b1, k_w2, k_b2 = jax.random.split(key, 5)
    x = jax.random.normal(k_x, (N, C, H, W), dtype=jnp.float32)

    # nn.Conv2d(C, 4C, 1): weight (4C, C, 1, 1) -> stored as (4C, C); bias (4C,)
    w1 = jax.random.normal(k_w1, (2 * ic, C), dtype=jnp.float32) * 0.1
    b1 = jax.random.normal(k_b1, (2 * ic,), dtype=jnp.float32) * 0.1
    # nn.Conv2d(2C, C, 1): weight (C, 2C, 1, 1) -> stored as (C, 2C); bias (C,)
    w2 = jax.random.normal(k_w2, (C, ic), dtype=jnp.float32) * 0.1
    b2 = jax.random.normal(k_b2, (C,), dtype=jnp.float32) * 0.1

    out = conv_ffn_pallas(x, w1, b1, w2, b2)
    out = jax.block_until_ready(out)

    ref = conv_ffn_reference(x, w1, b1, w2, b2)
    assert out.shape == (N, C, H, W)
    # bf16 MXU operands / bf16 gate with f32 accumulation -> bf16-level tolerance.
    assert jnp.allclose(out, ref, atol=3e-2, rtol=3e-2), "mismatch vs reference"

    print("KERNEL_OK")
</pallas_src>

<mosaic_0001>
module attributes {stable_mosaic.version = 11 : i64} {
  func.func @_convffn_kernel(%arg0: i32, %arg1: i32, %arg2: memref<1x4x256xf32, #tpu.memory_space<vmem>>, %arg3: memref<16x4xbf16, #tpu.memory_space<vmem>>, %arg4: memref<16x1xf32, #tpu.memory_space<vmem>>, %arg5: memref<4x8xbf16, #tpu.memory_space<vmem>>, %arg6: memref<4x1xf32, #tpu.memory_space<vmem>>, %arg7: memref<1x4x256xf32, #tpu.memory_space<vmem>>) attributes {dimension_semantics = [#tpu.dimension_semantics<parallel>, #tpu.dimension_semantics<parallel>], iteration_bounds = array<i64: 2, 1>, scalar_prefetch = 0 : i64, scratch_operands = 0 : i64, tpu.core_type = #tpu.core_type<tc>, window_params = [{transform_indices = @transform_0, window_bounds = array<i64: 1, 4, 256>}, {pipeline_mode = #tpu.pipeline_mode<synchronous>, transform_indices = @transform_1, window_bounds = array<i64: 16, 4>}, {pipeline_mode = #tpu.pipeline_mode<synchronous>, transform_indices = @transform_2, window_bounds = array<i64: 16, 1>}, {pipeline_mode = #tpu.pipeline_mode<synchronous>, transform_indices = @transform_3, window_bounds = array<i64: 4, 8>}, {pipeline_mode = #tpu.pipeline_mode<synchronous>, transform_indices = @transform_4, window_bounds = array<i64: 4, 1>}, {transform_indices = @transform_5, window_bounds = array<i64: 1, 4, 256>}]} {
    %c0 = arith.constant 0 : index
    %c0_0 = arith.constant 0 : index
    %0 = vector.load %arg3[%c0, %c0_0] : memref<16x4xbf16, #tpu.memory_space<vmem>>, vector<16x4xbf16>
    %c0_1 = arith.constant 0 : index
    %c0_2 = arith.constant 0 : index
    %1 = vector.load %arg4[%c0_1, %c0_2] : memref<16x1xf32, #tpu.memory_space<vmem>>, vector<16x1xf32>
    %c0_3 = arith.constant 0 : index
    %c0_4 = arith.constant 0 : index
    %2 = vector.load %arg5[%c0_3, %c0_4] : memref<4x8xbf16, #tpu.memory_space<vmem>>, vector<4x8xbf16>
    %c0_5 = arith.constant 0 : index
    %c0_6 = arith.constant 0 : index
    %3 = vector.load %arg6[%c0_5, %c0_6] : memref<4x1xf32, #tpu.memory_space<vmem>>, vector<4x1xf32>
    %c0_7 = arith.constant 0 : index
    %c0_8 = arith.constant 0 : index
    %c0_9 = arith.constant 0 : index
    %4 = vector.load %arg2[%c0_7, %c0_8, %c0_9] : memref<1x4x256xf32, #tpu.memory_space<vmem>>, vector<1x4x256xf32>
    %5 = vector.shape_cast %4 : vector<1x4x256xf32> to vector<4x256xf32>
    %6 = arith.truncf %5 : vector<4x256xf32> to vector<4x256xbf16>
    %cst = arith.constant dense<0.000000e+00> : vector<16x256xf32>
    %7 = tpu.matmul %0, %6, %cst {dimension_numbers = #tpu.dot_dimension_numbers<[1], [0], [0], [1], [0, 0, 1, 1], [], []>} : vector<16x4xbf16>, vector<4x256xbf16>, vector<16x256xf32> -> vector<16x256xf32>
    %8 = vector.broadcast %1 : vector<16x1xf32> to vector<16x256xf32>
    %9 = arith.addf %7, %8 : vector<16x256xf32>
    %10 = vector.extract_strided_slice %9 {offsets = [0, 0], sizes = [8, 256], strides = [1, 1]} : vector<16x256xf32> to vector<8x256xf32>
    %11 = vector.extract_strided_slice %9 {offsets = [8, 0], sizes = [8, 256], strides = [1, 1]} : vector<16x256xf32> to vector<8x256xf32>
    %12 = arith.truncf %10 : vector<8x256xf32> to vector<8x256xbf16>
    %13 = arith.truncf %11 : vector<8x256xf32> to vector<8x256xbf16>
    %cst_10 = arith.constant 0.000000e+00 : bf16
    %14 = vector.broadcast %cst_10 : bf16 to vector<8x256xbf16>
    %15 = arith.cmpf oge, %13, %14 : vector<8x256xbf16>
    %cst_11 = arith.constant 1.000980e-01 : bf16
    %16 = vector.broadcast %cst_11 : bf16 to vector<8x256xbf16>
    %17 = arith.mulf %13, %16 : vector<8x256xbf16>
    %18 = arith.select %15, %13, %17 : vector<8x256xi1>, vector<8x256xbf16>
    %19 = arith.mulf %12, %18 : vector<8x256xbf16>
    %cst_12 = arith.constant dense<0.000000e+00> : vector<4x256xf32>
    %20 = tpu.matmul %2, %19, %cst_12 {dimension_numbers = #tpu.dot_dimension_numbers<[1], [0], [0], [1], [0, 0, 1, 1], [], []>} : vector<4x8xbf16>, vector<8x256xbf16>, vector<4x256xf32> -> vector<4x256xf32>
    %21 = vector.broadcast %3 : vector<4x1xf32> to vector<4x256xf32>
    %22 = arith.addf %20, %21 : vector<4x256xf32>
    %23 = arith.addf %5, %22 : vector<4x256xf32>
    %c0_13 = arith.constant 0 : index
    %c0_14 = arith.constant 0 : index
    %c0_15 = arith.constant 0 : index
    %24 = vector.load %arg7[%c0_13, %c0_14, %c0_15] : memref<1x4x256xf32, #tpu.memory_space<vmem>>, vector<1x4x256xf32>
    %25 = vector.shape_cast %24 : vector<1x4x256xf32> to vector<4x256xf32>
    %26 = vector.shape_cast %23 : vector<4x256xf32> to vector<1x4x256xf32>
    tpu.vector_store %arg7[%c0_13, %c0_14, %c0_15], %26 {strides = array<i32>} : memref<1x4x256xf32, #tpu.memory_space<vmem>>, vector<1x4x256xf32>,
    return
  }
  func.func @transform_0(%arg0: i32, %arg1: i32) -> (i32, i32, i32) {
    %c0_i32 = arith.constant 0 : i32
    %c0_i32_0 = arith.constant 0 : i32
    return %arg0, %c0_i32, %arg1 : i32, i32, i32
  }
  func.func @transform_1(%arg0: i32, %arg1: i32) -> (i32, i32) {
    %c0_i32 = arith.constant 0 : i32
    %c0_i32_0 = arith.constant 0 : i32
    %c0_i32_1 = arith.constant 0 : i32
    return %c0_i32, %c0_i32_0 : i32, i32
  }
  func.func @transform_2(%arg0: i32, %arg1: i32) -> (i32, i32) {
    %c0_i32 = arith.constant 0 : i32
    %c0_i32_0 = arith.constant 0 : i32
    %c0_i32_1 = arith.constant 0 : i32
    return %c0_i32, %c0_i32_0 : i32, i32
  }
  func.func @transform_3(%arg0: i32, %arg1: i32) -> (i32, i32) {
    %c0_i32 = arith.constant 0 : i32
    %c0_i32_0 = arith.constant 0 : i32
    %c0_i32_1 = arith.constant 0 : i32
    return %c0_i32, %c0_i32_0 : i32, i32
  }
  func.func @transform_4(%arg0: i32, %arg1: i32) -> (i32, i32) {
    %c0_i32 = arith.constant 0 : i32
    %c0_i32_0 = arith.constant 0 : i32
    %c0_i32_1 = arith.constant 0 : i32
    return %c0_i32, %c0_i32_0 : i32, i32
  }
  func.func @transform_5(%arg0: i32, %arg1: i32) -> (i32, i32, i32) {
    %c0_i32 = arith.constant 0 : i32
    %c0_i32_0 = arith.constant 0 : i32
    return %arg0, %c0_i32, %arg1 : i32, i32, i32
  }
}

</mosaic_0001>

<bundles_post_ra>
// kernel: tpu_custom_call.1
= control target key start
LH: loop header
LB: loop body
LE: loop exit
PB: predicated region body
PF: predicated region fallthrough
CT: control target
= control target key end

     0   :  { %10 = vsyncpa [#allocation3], 0  ;;  %s809_s0 = inlined_call_operand.vmem [shape: f32[2,4,256], index: 0, kind: input, shape index: {}]   ;;  %s810_s1 = inlined_call_operand.vmem [shape: bf16[16,4], index: 1, kind: input, shape index: {}]   ;;  %s811_s2 = inlined_call_operand.vmem [shape: f32[16,1], index: 2, kind: input, shape index: {}]   ;;  %s812_s3 = inlined_call_operand.vmem [shape: bf16[4,8], index: 3, kind: input, shape index: {}]   ;;  %s813_s4 = inlined_call_operand.vmem [shape: f32[4,1], index: 4, kind: input, shape index: {}]   ;;  %s814_s5 = inlined_call_operand.hbm [shape: f32[2,4,256], index: 5, kind: output, shape index: {}]  }
   0x1   :  { %12 = vsyncpa [#allocation3 + $0x1], 0  ;;  %s695_s18 = smov 0   ;;  %s697_s19 = smov 0  }
   0x2   :  { %s699_s20 = smov 0   ;;  %s701_s21 = smov 0  }
   0x3   :  { %s703_s22 = smov 0   ;;  %s705_s23 = smov 0  }
   0x4 LB: > { %s505_s24 = sadd.s32 4294967295, %s661_s23   ;;  %s506_s25 = sadd.s32 4294967294, %s661_s23   ;;  %s661_s23 = sphi %s705_s23, %s18_s23   ;;  %s657_s22 = sphi %s703_s22, %s821_s22   ;;  %s653_s21 = sphi %s701_s21, %s820_s21   ;;  %s649_s20 = sphi %s699_s20, %s819_s20   ;;  %s645_s19 = sphi %s697_s19, %s818_s19   ;;  %s641_s18 = sphi %s695_s18, %s817_s18  }
   0x5   : > { %s30_s26 = sadd.s32 1, %s657_s22  ;;  %s151_s27 = sadd.s32 1, %s649_s20 }
   0x6   : > { %p32_p0 = scmp.ge.s32.totalorder %s30_s26, 2  ;;  %p161_p1 = scmp.ne.s32.totalorder %s649_s20, %s645_s19 }
   0x7   : > { %p162_p2 = scmp.eq.s32.totalorder %s505_s24, 1  ;;  %p167_p3 = scmp.ne.s32.totalorder %s645_s19, %s641_s18 }
   0x8   : > { %s823_s26 = smov (%p32_p0, %s30_s26), 0  ;;  %p168_p5 = scmp.eq.s32.totalorder %s506_s25, 1 }
   0x9   : > { %p735_p4 = por %p162_p2, %p161_p1  ;;  %s146_s29 = ssub.s32 %s657_s22, %s823_s26 }
   0xa   : > { %p509_p6 = scmp.ge.s32.totalorder %s661_s23, 1  ;;  %p149_p7 = scmp.eq.s32.totalorder %s146_s29, 0 }
   0xb   : > { %p742_p8 = por %p168_p5, %p167_p3  ;;  %p211_p9 = scmp.lt.s32.totalorder %s661_s23, 3 }
   0xc   : > { %s748_s6 = scalar_select %p149_p7, %s649_s20, %s151_s27  }
   0xd   : > { %p212_p10 = pnand %p509_p6, %p211_p9 }
   0xe   : > { %p244_p11 = scmp.lt.s32.totalorder (!%p212_p10), %s653_s21, 1  ;;  %s240_s7 = sand.u32 (!%p212_p10), 1, %s645_s19  }
   0xf   : > { %215 = sbr.rel (%p212_p10) target bundleno = 459 (0x1cb), region = 40  ;;  %s510_s8 = sshll.u32 (!%p212_p10), %s240_s7, 3 }
  0x10   : > { %s242_s10 = scalar_lea.vmem (!%p212_p10), [#allocation2], %s510_s8  ;;  %s664_s17 = smov (!%p212_p10), [#allocation2]  }
  0x11   : > { %s429_s11 = sshll.u32 (!%p212_p10), %s242_s10, 4  ;;  %s589_s24 = sshll.u32 (!%p212_p10), %s664_s17, 4  ;;  %s430_s11 = int_to_ptr.vmem [resolvable:$true] %s429_s11  ;;  %s590_s24 = int_to_ptr.vmem [resolvable:$false] %s589_s24 }
  0x12   : > { %s585_s16 = scalar_lea.vmem (!%p212_p10), %s430_s11, 128  ;;  %p592_p1 = scmp.lt.s32.totalorder (!%p212_p10), %s430_s11, %s590_s24 }
  0x13   : > { %p586_p12 = scmp.ne.s32.totalorder (!%p212_p10), %s430_s11, %s585_s16 }
  0x14   : > { %v663_v0 = vmov 0   ;;  %v259_v1 = vld [vmem:[%s811_s2 + $0x8] sm:$0xff]  ;;  %s245_s9 = scalar_select %p244_p11, %s653_s21, 1  ;;  %v258_v2 = vld [vmem:[%s811_s2] sm:$0xff]  ;;  %vm287_vm0 = vcmask 1041408   ;;  %vm283_vm1 = vcmask 31744  }
  0x15   : > { %326 = vmatprep.mubr.bf16.mxu0 %v663_v0  ;;  %581 = vset.pattern.permute.xlu0 %v663_v0  ;;  %v584_v8 = vld [vmem:[%s810_s1] sm:$0xff]   ;;  %vm358_vm4 = vcmask 1043456   ;;  %vm354_vm5 = vcmask 64512   ;;  %p587_p13 = pnand %p586_p12, %p735_p4 }
  0x16   : > { %275 = vperm.xlu0 %581, %v259_v1   ;;  %397 = vmatprep.mubr.bf16.mxu1 %v663_v0  ;;  %s523_s12 = sshll.u32 %s245_s9, 3  ;;  %v261_v9 = vld [vmem:[%s813_s4] sm:$0xf]  ;;  %s524_s9 = sshll.u32 %s653_s21, 7 }
  0x17   : > { %582 = vset.pattern.permute.xlu1 %v663_v0  ;;  %s251_s15 = scalar_lea.vmem %s809_s0, %s523_s12  ;;  %v260_v31 = vld [vmem:[%s812_s3] sm:$0x3]  ;;  %s427_s14 = scalar_lea.hbm %s814_s5, %s524_s9 }
  0x18   : > { %v262_v3 = vld [vmem:[%s251_s15] sm:$0xff]  ;;  %351 = vperm.xlu1 %582, %v261_v9   ;;  %s413_s15 = scalar_lea.sflag [#allocation3], %s240_s7  ;;  %p588_p0 = pneg %p587_p13 }
  0x19   : > { %v264_v4 = vcombine.high %v262_v3, %v262_v3  ;;  %v266_v5 = vpack.c.bf16 %v262_v3, %v262_v3  ;;  %s591_s21 = scalar_lea.vmem %s590_s24, 256 }
  0x1a   : > { %270 = vperm.xlu0 %581, %v258_v2   ;;  %p593_p2 = scmp.lt.s32.totalorder %s591_s21, %s585_s16 }
  0x1b   : > { %v267_v6 = vpack.c.bf16 %v264_v4, %v264_v4  ;;  %v289_v7 = vsel %vm287_vm0, %v266_v5, 0 }
  0x1c   : > { %p594_p3 = por %p593_p2, %p592_p1 }
  0x1d   : > { %514 = vmatprep.subr.msk.bf16.mxu0 %vm287_vm0, %v267_v6 }
  0x1e   : > { %309 = vmatpush1.bf16.msra.mxu0 %v289_v7  ;;  %p595_p5 = pnand %p594_p3, %p588_p0 }
  0x21   : > { %515 = vmatmul.mubr.msk.bf16.vlgmr.msra.gmra.mxu0 %vm283_vm1, %v584_v8 }
  0x91   : > { %v276_v10 = vpop.permute.xlu0 %275 }
  0x93   : > { %v352_v32 = vpop.permute.xlu1 %351 }
  0x95   : > { %v271_v13 = vpop.permute.xlu0 %270 }
  0xe1   : > { %v328_v11 = vpop.f32.mrf.mxu0 }
  0xe2   : > { %v329_v16 = vadd.f32 %v328_v11, %v271_v13 }
  0xe3   : > { %v330_v12 = vpop.f32.mrf.mxu0 }
  0xe4   : > { %v331_v20 = vadd.f32 %v330_v12, %v271_v13  ;;  %v337_v23 = vpack.c.bf16 %v329_v16, %v329_v16 }
  0xe5   : > { %v332_v14 = vpop.f32.mrf.mxu0 }
  0xe6   : > { %v333_v15 = vadd.f32 %v332_v14, %v276_v10  ;;  %v338_v26 = vpack.c.bf16 %v331_v20, %v331_v20 }
  0xe7   : > { %v334_v17 = vpop.f32.mrf.mxu0 }
  0xe8   : > { %v339_v18 = vpack.c.bf16 %v333_v15, %v333_v15  ;;  %v335_v19 = vadd.f32 %v334_v17, %v276_v10 }
  0xea   : > { %vm341_vm2 = vcmp.ge.bf16.partialorder %v339_v18, 0  ;;  %v343_v21 = vmul.bf16 1036860877, %v339_v18  ;;  %v340_v22 = vpack.c.bf16 %v335_v19, %v335_v19 }
  0xec   : > { %v344_v24 = vmul.bf16 1036860877, %v340_v22  ;;  %vm342_vm3 = vcmp.ge.bf16.partialorder %v340_v22, 0  ;;  %v345_v25 = vsel %vm341_vm2, %v339_v18, %v343_v21 }
  0xed   : > { %v347_v27 = vmul.bf16 %v345_v25, %v337_v23 }
  0xee   : > { %v346_v28 = vsel %vm342_vm3, %v340_v22, %v344_v24 }
  0xef   : > { %v348_v29 = vmul.bf16 %v346_v28, %v338_v26  ;;  %v360_v30 = vsel %vm358_vm4, %v347_v27, 0 }
  0xf1   : > { %516 = vmatprep.subr.msk.bf16.mxu1 %vm358_vm4, %v348_v29 }
  0xf2   : > { %380 = vmatpush1.bf16.msra.mxu1 %v360_v30 }
  0xf5   : > { %517 = vmatmul.mubr.msk.bf16.vlgmr.msra.gmra.mxu1 %vm354_vm5, %v260_v31 }
 0x1b5   : > { %v399_v33 = vpop.f32.mrf.mxu1 }
 0x1b6   : > { %v400_v35 = vadd.f32 %v399_v33, %v352_v32 }
 0x1b7   : > { %v401_v34 = vpop.f32.mrf.mxu1 }
 0x1b8   : > { %v402_v36 = vadd.f32 %v401_v34, %v352_v32 }
 0x1b9   : > { %v403_v37 = vpop.f32.mrf.mxu1 }
 0x1ba   : > { %v408_v38 = vcombine.low %v400_v35, %v402_v36 }
 0x1bb   : > { %v404_v39 = vpop.f32.mrf.mxu1 }
 0x1bc   : > { %v410_v40 = vadd.f32 %v408_v38, %v262_v3 }
 0x1be   : > { %411 = vst [vmem:[%s242_s10] sm:$0xff] %v410_v40 }
 0x1bf   : > { %598 = shalt.err (!%p595_p5)
}
 0x1c0   : > { %s599_s25 = scalar_lea.hbm %s427_s14, 128  ;;  %s603_s7 = scalar_lea.hbm %s814_s5, 256 }
 0x1c1   : > { %p600_p6 = scmp.ne.s32.totalorder %s427_s14, %s599_s25  ;;  %p604_p10 = scmp.lt.s32.totalorder %s427_s14, %s814_s5 }
 0x1c2   : > { %p605_p11 = scmp.lt.s32.totalorder %s603_s7, %s599_s25 }
 0x1c3   : > { %p601_p7 = pnand %p600_p6, %p735_p4 }
 0x1c4   : > { %p606_p12 = por %p605_p11, %p604_p10 }
 0x1c5   : > { %p602_p9 = pneg %p601_p7 }
 0x1c7   : > { %p607_p13 = pnand %p606_p12, %p602_p9 }
 0x1c9   : > { %610 = shalt.err (!%p607_p13)
}
 0x1ca   : > { %525 = dma.vmem_to_hbm [thread:$0]  (%p735_p4), %s430_s11, 128, %s427_s14, %s413_s15  }
 0x1cb PF: > { %p531_p0 = scmp.ge.s32.totalorder %s661_s23, 2  ;;  %s441_s10 = sand.u32 1, %s641_s18  }
 0x1cc   : > { %s442_s12 = scalar_lea.sflag [#allocation3], %s441_s10 }
 0x1cd   : > { %p528_p1 = pnand %p531_p0, %p742_p8 }
 0x1cf   : > { %p529_p2 = pneg %p528_p1 }
 0x1d1   : > { %636 = dma.done.wait (%p529_p2), %s442_s12, 128  }
 0x1d2   : > { %638 = vsyncadd (%p529_p2), %s442_s12, 4294967168  ;;  %s18_s23 = sadd.s32 1, %s661_s23   ;;  %s817_s18 = smov %s645_s19 }
 0x1d3   : > { %p15_p3 = scmp.ge.s32.totalorder %s18_s23, 4   ;;  %s818_s19 = smov %s649_s20 }
 0x1d4   : > { %s819_s20 = smov %s748_s6  ;;  %s820_s21 = smov %s657_s22 }
 0x1d5   : > { %s821_s22 = smov %s823_s26  ;;  %17 = sbr.rel (!%p15_p3) target bundleno = 4 (0x4), region = 75 }
 0x1da   :  { %447 = vsyncpa [#allocation3], 1 }
 0x1db   :  { %449 = vsyncpa [#allocation3 + $0x1], 1 }

</bundles_post_ra>
